<compile_context>
chip_gen: v7x
topology: tpu7x:2x2x1
jax: 0.10.0
libtpu: 0.0.40
codegen_flags: <defaults>
</compile_context>

<pallas_src>
import functools

import jax
import jax.numpy as jnp
from jax.experimental import pallas as pl
from jax.experimental.pallas import tpu as pltpu

EPS = 1e-6  # LayerNorm eps from the PyTorch module (10**-6)


def _round_up(v: int, m: int) -> int:
    return ((v + m - 1) // m) * m


def _vmem_capacity_bytes() -> int:
    """Physical VMEM of the attached TPU; conservative v7x default if unqueryable."""
    try:
        return int(getattr(pltpu.get_tpu_info(), "vmem_capacity_bytes", 64 << 20))
    except Exception:
        return 64 << 20


def _largest_div8(n: int, cap: int) -> int:
    """Largest multiple-of-8 divisor of n (n % 8 == 0) that is <= cap."""
    t = max(8, (min(cap, n) // 8) * 8)
    while t > 8 and n % t:
        t -= 8
    return t


def _hash_u32(v):
    """Bob Jenkins' 32-bit integer mix: add/xor/shift only (no vector multiply)."""
    v = (v + jnp.uint32(0x7ED55D16)) + (v << jnp.uint32(12))
    v = (v ^ jnp.uint32(0xC761C23C)) ^ (v >> jnp.uint32(19))
    v = (v + jnp.uint32(0x165667B1)) + (v << jnp.uint32(5))
    v = (v + jnp.uint32(0xD3A2646C)) ^ (v << jnp.uint32(9))
    v = (v + jnp.uint32(0xFD7046C5)) + (v << jnp.uint32(3))
    v = (v ^ jnp.uint32(0xB55A4F09)) ^ (v >> jnp.uint32(16))
    return v


def _resnet_kernel(seed_ref, x_ref, p_ref, w_ref, o_ref, *,
                   f_real, keep_prob, bf16_matmul):
    """One row-tile of: out = x + keep_mask * (LayerNorm(x) @ W + b).

    LayerNorm matches the PyTorch reference exactly:
        alpha * (x - mean) / (std + eps) + beta
    with unbiased std (torch.std default, ddof=1) and eps added to std.
    Padded feature columns of alpha/beta/W/b are zero, so padded output columns stay
    zero and are sliced off in the wrapper (when padding was needed at all).
    """
    x = x_ref[...]                                        # (TR, F_pad) f32
    tr, f_pad = x.shape
    inv_n = jnp.float32(1.0 / f_real)
    inv_nm1 = jnp.float32(1.0 / max(f_real - 1, 1))       # guard F == 1

    mean = jnp.sum(x, axis=-1, keepdims=True) * inv_n     # padded cols of x are 0
    xc = x - mean
    if f_real != f_pad:
        # (1, F_pad) broadcast mask: only the variance needs the padded lanes zeroed
        # (alpha/beta are zero there, so `normed` padded cols are already 0).
        lane = jax.lax.broadcasted_iota(jnp.int32, (1, f_pad), 1)
        xc_v = jnp.where(lane < f_real, xc, 0.0)
    else:
        xc_v = xc
    var = jnp.sum(xc_v * xc_v, axis=-1, keepdims=True) * inv_nm1
    std = jnp.sqrt(var)                                   # unbiased std, like torch

    # 1 / (std + eps): EUP approx reciprocal + one Newton step (error ~2^-24).
    d = std + jnp.float32(EPS)
    inv = pl.reciprocal(d, approx=True)
    inv = inv * (jnp.float32(2.0) - d * inv)

    p = p_ref[...]                                        # (3, F_pad): alpha/beta/bias
    alpha = p[0:1, :]
    beta = p[1:2, :]
    bias = p[2:3, :]
    normed = alpha * xc * inv + beta                      # padded cols -> 0

    # sublayer: Linear(F, F) on the MXU (W already bf16 when bf16_matmul).
    if bf16_matmul:
        y = jnp.dot(normed.astype(jnp.bfloat16), w_ref[...],
                    preferred_element_type=jnp.float32)
    else:
        y = jnp.dot(normed, w_ref[...], preferred_element_type=jnp.float32)
    y = y + bias

    # Dropout via arithmetic in-kernel hash PRNG (portable: TPU + interpret mode).
    if keep_prob <= 0.0:
        y = jnp.zeros_like(y)
    elif keep_prob < 1.0:
        rows = (jax.lax.broadcasted_iota(jnp.int32, (tr, f_pad), 0)
                + pl.program_id(0) * tr)                  # global row index
        cols = jax.lax.broadcasted_iota(jnp.int32, (tr, f_pad), 1)
        v = ((rows << 16) ^ cols) + seed_ref[0]
        h = _hash_u32(v.astype(jnp.uint32))
        u24 = (h >> jnp.uint32(8)).astype(jnp.int32).astype(jnp.float32)  # [0, 2^24)
        keep = u24 < jnp.float32(keep_prob * (1 << 24))
        y = jnp.where(keep, y * jnp.float32(1.0 / keep_prob), jnp.float32(0.0))

    # Residual add: re-read x from the ref so its live range stays short.
    o_ref[...] = x_ref[...] + y


@functools.partial(jax.jit,
                   static_argnames=("dropout_p", "tile_rows", "bf16_matmul"))
def resnet_forward(x, alpha, beta, w, b, seed, *,
                   dropout_p=0.0, tile_rows=None, bf16_matmul=None):
    """x: (B, S, F) f32;  alpha/beta/b: (F,);  w: (F, F);  seed: int32 scalar."""
    B, S, F = x.shape
    R = B * S
    F_pad = _round_up(F, 128)              # lane-dense feature axis
    R8 = _round_up(R, 8)                   # rows padded only to sublane multiple
    keep_prob = 1.0 - float(dropout_p)

    # bf16 MXU operands by default at large F (v6e/v7x bf16-native; halves W traffic).
    if bf16_matmul is None:
        bf16_matmul = F_pad >= 512
    bf16_matmul = bool(bf16_matmul)
    w_dtype = jnp.bfloat16 if bf16_matmul else jnp.float32
    w_bpe = 2 if bf16_matmul else 4
    single_buffer_w = F_pad >= 1024        # constant index_map -> never re-fetched

    # ---- per-generation VMEM budget -> row tile size --------------------------------
    budget = min(int(_vmem_capacity_bytes() * 0.75), 96 << 20)   # headroom for scratch
    w_foot = (1 if single_buffer_w else 2) * F_pad * F_pad * w_bpe
    p_foot = (1 if single_buffer_w else 2) * 3 * F_pad * 4
    per_row = 16 * F_pad                   # x + out, double-buffered, f32
    avail = max(budget - w_foot - p_foot - (2 << 20), 8 * per_row)
    tr_budget = max(8, ((avail // per_row) // 8) * 8)
    if tile_rows is None:
        tile_rows = 1024 if F_pad <= 256 else 512
    tr_cap = max(8, (min(tile_rows, tr_budget, R8) // 8) * 8)

    tr = _largest_div8(R8, tr_cap)         # largest tile that divides R8 (no row pad)
    R_pad = R8
    if tr < min(128, tr_cap) and R8 > tr_cap:
        # Pathological divisor structure: accept a small row pad to keep big tiles.
        tr = tr_cap
        R_pad = _round_up(R8, tr)
    if R_pad // tr < 2 and R_pad >= 16:
        # >= 2 grid steps so "parallel" sharding keeps both v7x TensorCores busy.
        tr = _largest_div8(R_pad, R_pad // 2)
    grid = (R_pad // tr,)

    # ---- operand prep (fast path: zero copies when already aligned) -----------------
    x2 = x.reshape(R, F)
    need_pad = (R_pad != R) or (F_pad != F)
    if need_pad:
        x2 = jnp.pad(x2, ((0, R_pad - R), (0, F_pad - F)))
    params = jnp.stack([alpha, beta, b], axis=0)          # (3, F) fused operand
    if F_pad != F:
        params = jnp.pad(params, ((0, 0), (0, F_pad - F)))
        w = jnp.pad(w, ((0, F_pad - F), (0, F_pad - F)))
    w2 = w.astype(w_dtype)                                # cast once, in the wrapper
    seed_arr = jnp.reshape(jnp.asarray(seed, dtype=jnp.int32), (1,))

    vmem_est = 4 * tr * F_pad * 4 + w_foot + p_foot       # x+out dbuf + W + params
    vmem_limit = int(max(16 << 20, min(vmem_est + (4 << 20), budget)))

    kernel = functools.partial(_resnet_kernel, f_real=F, keep_prob=keep_prob,
                               bf16_matmul=bf16_matmul)

    x_spec = pl.BlockSpec((tr, F_pad), lambda i, *_: (i, 0))
    o_spec = pl.BlockSpec((tr, F_pad), lambda i, *_: (i, 0))
    if single_buffer_w:
        # Resident operands: single-buffer to save VMEM (critical on v7x's 64 MiB).
        w_spec = pl.BlockSpec((F_pad, F_pad), lambda i, *_: (0, 0),
                              pipeline_mode=pl.Buffered(1))
        p_spec = pl.BlockSpec((3, F_pad), lambda i, *_: (0, 0),
                              pipeline_mode=pl.Buffered(1))
    else:
        w_spec = pl.BlockSpec((F_pad, F_pad), lambda i, *_: (0, 0))
        p_spec = pl.BlockSpec((3, F_pad), lambda i, *_: (0, 0))

    cost = pl.CostEstimate(
        flops=int(2 * R_pad * F_pad * F_pad + 10 * R_pad * F_pad),
        transcendentals=int(2 * R_pad),
        bytes_accessed=int(2 * R_pad * F_pad * 4 + F_pad * F_pad * w_bpe
                           + 3 * F_pad * 4),
    )

    out = pl.pallas_call(
        kernel,
        out_shape=jax.ShapeDtypeStruct((R_pad, F_pad), jnp.float32),
        grid_spec=pltpu.PrefetchScalarGridSpec(
            num_scalar_prefetch=1,
            grid=grid,
            in_specs=[x_spec, p_spec, w_spec],
            out_specs=o_spec,
        ),
        compiler_params=pltpu.CompilerParams(
            dimension_semantics=("parallel",),
            vmem_limit_bytes=vmem_limit,
        ),
        cost_estimate=cost,
    )(seed_arr, x2, params, w2)

    if need_pad:
        out = out[:R, :F]
    return out.reshape(B, S, F)


def _reference_no_dropout(x, alpha, beta, w, b):
    """Pure-JAX reference of the PyTorch forward (eval mode / keep_prob=1)."""
    mean = jnp.mean(x, axis=-1, keepdims=True)
    std = jnp.std(x, axis=-1, keepdims=True, ddof=1)      # torch.std is unbiased
    normed = alpha * (x - mean) / (std + EPS) + beta
    return x + (normed @ w + b)


if __name__ == "__main__":
    # Small shapes consistent with the module: (batch=2, seq=8, features=32)
    B, S, F = 2, 8, 32
    dropout_p = 0.1

    key = jax.random.PRNGKey(0)
    kx, kw, kb = jax.random.split(key, 3)

    x = jax.random.normal(kx, (B, S, F), dtype=jnp.float32)

    # LayerNorm parameters (torch init: alpha=1, bias=0)
    alpha = jnp.ones((F,), jnp.float32)
    beta = jnp.zeros((F,), jnp.float32)

    # Deterministic sublayer (Linear(F, F)) parameters
    w = jax.random.normal(kw, (F, F), dtype=jnp.float32) * (1.0 / jnp.sqrt(F))
    b = jax.random.normal(kb, (F,), dtype=jnp.float32) * 0.01

    # --- 1) eval / no-dropout path: exact comparison against pure-JAX reference
    out_eval = jax.block_until_ready(
        resnet_forward(x, alpha, beta, w, b, 0, dropout_p=0.0))
    ref = _reference_no_dropout(x, alpha, beta, w, b)
    assert out_eval.shape == (B, S, F)
    assert jnp.allclose(out_eval, ref, atol=1e-4, rtol=1e-4), "mismatch vs reference"

    # --- 2) train path: in-kernel hash dropout; verify dropout semantics
    out_train = jax.block_until_ready(
        resnet_forward(x, alpha, beta, w, b, 1234, dropout_p=dropout_p))
    keep_prob = 1.0 - dropout_p
    mean = jnp.mean(x, axis=-1, keepdims=True)
    std = jnp.std(x, axis=-1, keepdims=True, ddof=1)
    normed = alpha * (x - mean) / (std + EPS) + beta
    y_scaled = (normed @ w + b) / keep_prob
    diff = out_train - x
    # every element is either dropped (diff == 0) or kept-and-scaled (diff == y/kp)
    elem_err = jnp.minimum(jnp.abs(diff), jnp.abs(diff - y_scaled))
    assert float(jnp.max(elem_err)) < 1e-3, "dropout output not in {0, y/keep_prob}"
    sig = (jnp.abs(y_scaled) > 1e-2).astype(jnp.float32)
    dropped = (jnp.abs(diff) < 1e-5).astype(jnp.float32) * sig
    drop_frac = float(jnp.sum(dropped) / jnp.maximum(jnp.sum(sig), 1.0))
    assert 0.0 < drop_frac < 0.5, f"implausible drop fraction {drop_frac}"

    print("KERNEL_OK")
</pallas_src>

<mosaic_0001>
module attributes {stable_mosaic.version = 11 : i64} {
  func.func @_resnet_kernel(%arg0: i32, %arg1: memref<1xi32, #tpu.memory_space<smem>>, %arg2: memref<8x128xf32, #tpu.memory_space<vmem>>, %arg3: memref<3x128xf32, #tpu.memory_space<vmem>>, %arg4: memref<128x128xf32, #tpu.memory_space<vmem>>, %arg5: memref<8x128xf32, #tpu.memory_space<vmem>>) attributes {dimension_semantics = [#tpu.dimension_semantics<parallel>], iteration_bounds = array<i64: 2>, scalar_prefetch = 1 : i64, scratch_operands = 0 : i64, tpu.core_type = #tpu.core_type<tc>, window_params = [{transform_indices = @transform_0, window_bounds = array<i64: 8, 128>}, {pipeline_mode = #tpu.pipeline_mode<synchronous>, transform_indices = @transform_1, window_bounds = array<i64: 3, 128>}, {pipeline_mode = #tpu.pipeline_mode<synchronous>, transform_indices = @transform_2, window_bounds = array<i64: 128, 128>}, {transform_indices = @transform_3, window_bounds = array<i64: 8, 128>}]} {
    %c0 = arith.constant 0 : index
    %c0_0 = arith.constant 0 : index
    %0 = vector.load %arg2[%c0, %c0_0] : memref<8x128xf32, #tpu.memory_space<vmem>>, vector<8x128xf32>
    %cst = arith.constant dense<0.000000e+00> : vector<8xf32>
    %1 = vector.multi_reduction <add>, %0, %cst [1] : vector<8x128xf32> to vector<8xf32>
    %2 = vector.shape_cast %1 : vector<8xf32> to vector<8x1xf32>
    %cst_1 = arith.constant 3.125000e-02 : f32
    %3 = vector.broadcast %cst_1 : f32 to vector<8x1xf32>
    %4 = arith.mulf %2, %3 : vector<8x1xf32>
    %5 = vector.broadcast %4 : vector<8x1xf32> to vector<8x128xf32>
    %6 = arith.subf %0, %5 : vector<8x128xf32>
    %7 = tpu.iota {dimensions = array<i32: 1>} : vector<1x128xi32>
    %c32_i32 = arith.constant 32 : i32
    %8 = vector.broadcast %c32_i32 : i32 to vector<1x128xi32>
    %9 = arith.cmpi slt, %7, %8 : vector<1x128xi32>
    %cst_2 = arith.constant 0.000000e+00 : f32
    %10 = vector.shape_cast %9 : vector<1x128xi1> to vector<1x128xi1>
    %11 = vector.broadcast %10 : vector<1x128xi1> to vector<8x128xi1>
    %12 = vector.broadcast %cst_2 : f32 to vector<8x128xf32>
    %13 = arith.select %11, %6, %12 : vector<8x128xi1>, vector<8x128xf32>
    %14 = arith.mulf %13, %13 : vector<8x128xf32>
    %cst_3 = arith.constant dense<0.000000e+00> : vector<8xf32>
    %15 = vector.multi_reduction <add>, %14, %cst_3 [1] : vector<8x128xf32> to vector<8xf32>
    %16 = vector.shape_cast %15 : vector<8xf32> to vector<8x1xf32>
    %cst_4 = arith.constant 0.0322580636 : f32
    %17 = vector.broadcast %cst_4 : f32 to vector<8x1xf32>
    %18 = arith.mulf %16, %17 : vector<8x1xf32>
    %19 = math.sqrt %18 : vector<8x1xf32>
    %cst_5 = arith.constant 9.99999997E-7 : f32
    %20 = vector.broadcast %cst_5 : f32 to vector<8x1xf32>
    %21 = arith.addf %19, %20 : vector<8x1xf32>
    %22 = tpu.reciprocal %21 {approx = true} : vector<8x1xf32> -> vector<8x1xf32>
    %23 = arith.mulf %21, %22 : vector<8x1xf32>
    %cst_6 = arith.constant 2.000000e+00 : f32
    %24 = vector.broadcast %cst_6 : f32 to vector<8x1xf32>
    %25 = arith.subf %24, %23 : vector<8x1xf32>
    %26 = arith.mulf %22, %25 : vector<8x1xf32>
    %c0_7 = arith.constant 0 : index
    %c0_8 = arith.constant 0 : index
    %27 = vector.load %arg3[%c0_7, %c0_8] : memref<3x128xf32, #tpu.memory_space<vmem>>, vector<3x128xf32>
    %28 = vector.extract_strided_slice %27 {offsets = [0, 0], sizes = [1, 128], strides = [1, 1]} : vector<3x128xf32> to vector<1x128xf32>
    %29 = vector.extract_strided_slice %27 {offsets = [1, 0], sizes = [1, 128], strides = [1, 1]} : vector<3x128xf32> to vector<1x128xf32>
    %30 = vector.extract_strided_slice %27 {offsets = [2, 0], sizes = [1, 128], strides = [1, 1]} : vector<3x128xf32> to vector<1x128xf32>
    %31 = vector.broadcast %28 : vector<1x128xf32> to vector<8x128xf32>
    %32 = arith.mulf %31, %6 : vector<8x128xf32>
    %33 = vector.broadcast %26 : vector<8x1xf32> to vector<8x128xf32>
    %34 = arith.mulf %32, %33 : vector<8x128xf32>
    %35 = vector.broadcast %29 : vector<1x128xf32> to vector<8x128xf32>
    %36 = arith.addf %34, %35 : vector<8x128xf32>
    %c0_9 = arith.constant 0 : index
    %c0_10 = arith.constant 0 : index
    %37 = vector.load %arg4[%c0_9, %c0_10] : memref<128x128xf32, #tpu.memory_space<vmem>>, vector<128x128xf32>
    %cst_11 = arith.constant dense<0.000000e+00> : vector<8x128xf32>
    %38 = tpu.matmul %36, %37, %cst_11 {dimension_numbers = #tpu.dot_dimension_numbers<[1], [0], [0], [1], [0, 0, 1, 1], [], []>} : vector<8x128xf32>, vector<128x128xf32>, vector<8x128xf32> -> vector<8x128xf32>
    %39 = vector.broadcast %30 : vector<1x128xf32> to vector<8x128xf32>
    %40 = arith.addf %38, %39 : vector<8x128xf32>
    %c0_12 = arith.constant 0 : index
    %c0_13 = arith.constant 0 : index
    %41 = vector.load %arg2[%c0_12, %c0_13] : memref<8x128xf32, #tpu.memory_space<vmem>>, vector<8x128xf32>
    %42 = arith.addf %41, %40 : vector<8x128xf32>
    %c0_14 = arith.constant 0 : index
    %c0_15 = arith.constant 0 : index
    %43 = vector.load %arg5[%c0_14, %c0_15] : memref<8x128xf32, #tpu.memory_space<vmem>>, vector<8x128xf32>
    tpu.vector_store %arg5[%c0_14, %c0_15], %42 {strides = array<i32>} : memref<8x128xf32, #tpu.memory_space<vmem>>, vector<8x128xf32>,
    return
  }
  func.func @transform_0(%arg0: i32, %arg1: memref<1xi32, #tpu.memory_space<smem>>) -> (i32, i32) {
    %c0_i32 = arith.constant 0 : i32
    %c0_i32_0 = arith.constant 0 : i32
    return %arg0, %c0_i32 : i32, i32
  }
  func.func @transform_1(%arg0: i32, %arg1: memref<1xi32, #tpu.memory_space<smem>>) -> (i32, i32) {
    %c0_i32 = arith.constant 0 : i32
    %c0_i32_0 = arith.constant 0 : i32
    %c0_i32_1 = arith.constant 0 : i32
    return %c0_i32, %c0_i32_0 : i32, i32
  }
  func.func @transform_2(%arg0: i32, %arg1: memref<1xi32, #tpu.memory_space<smem>>) -> (i32, i32) {
    %c0_i32 = arith.constant 0 : i32
    %c0_i32_0 = arith.constant 0 : i32
    %c0_i32_1 = arith.constant 0 : i32
    return %c0_i32, %c0_i32_0 : i32, i32
  }
  func.func @transform_3(%arg0: i32, %arg1: memref<1xi32, #tpu.memory_space<smem>>) -> (i32, i32) {
    %c0_i32 = arith.constant 0 : i32
    %c0_i32_0 = arith.constant 0 : i32
    return %arg0, %c0_i32 : i32, i32
  }
}

</mosaic_0001>

<bundles_post_ra>
// kernel: resnet_forward.1
= control target key start
LH: loop header
LB: loop body
LE: loop exit
PB: predicated region body
PF: predicated region fallthrough
CT: control target
= control target key end

     0   :  { %s488_s15 = smov 0   ;;  %s574_s0 = inlined_call_operand.<no memory space> [shape: s32[1], index: 0, kind: input, shape index: {}]   ;;  %s575_s1 = inlined_call_operand.vmem [shape: f32[16,128], index: 1, kind: input, shape index: {}]   ;;  %s576_s2 = inlined_call_operand.vmem [shape: f32[3,128], index: 2, kind: input, shape index: {}]   ;;  %s577_s3 = inlined_call_operand.vmem [shape: f32[128,128], index: 3, kind: input, shape index: {}]   ;;  %s578_s4 = inlined_call_operand.vmem [shape: f32[16,128], index: 4, kind: output, shape index: {}]  }
   0x1 LB: > { %s352_s0 = sadd.s32 4294967295, %s458_s15   ;;  %p356_p0 = scmp.ge.s32.totalorder %s458_s15, 1  ;;  %s458_s15 = sphi %s488_s15, %s15_s15  }
   0x2   : > { %p138_p1 = scmp.lt.s32.totalorder %s458_s15, 3 }
   0x4   : > { %p139_p2 = pnand %p356_p0, %p138_p1 }
   0x5   : > { %p160_p3 = scmp.lt.s32.totalorder (!%p139_p2), %s352_s0, 1  ;;  %v173_v1 = vlaneseq (!%p139_p2)  ;;  %v207_v8 = vld [vmem:[%s577_s3] sm:$0xff] (!%p139_p2)  ;;  %v208_v9 = vld [vmem:[%s577_s3 + $0x8] sm:$0xff] (!%p139_p2)  ;;  %v460_v11 = vmov (!%p139_p2), 0.0|0.0   ;;  %v209_v12 = vld [vmem:[%s577_s3 + $0x10] sm:$0xff] (!%p139_p2)  ;;  %vm461_vm1 = vmmov (!%p139_p2), 0  }
   0x6   : > { %142 = sbr.rel (%p139_p2) target bundleno = 565 (0x235), region = 32  ;;  %v414_v10 = vpack.c.bf16 (!%p139_p2), %v208_v9, %v207_v8  ;;  %413 = vmatprep.subr.bf16.mxu0 (!%p139_p2), %v460_v11  ;;  %v210_v13 = vld [vmem:[%s577_s3 + $0x18] sm:$0xff] (!%p139_p2)  ;;  %v211_v15 = vld [vmem:[%s577_s3 + $0x20] sm:$0xff] (!%p139_p2)  ;;  %v212_v16 = vld [vmem:[%s577_s3 + $0x28] sm:$0xff] (!%p139_p2)  ;;  %v462_v20 = vmov (!%p139_p2), 0.0  }
   0x7   : > { %v174_v2 = vand.u32 (!%p139_p2), 127, %v173_v1  ;;  %v417_v14 = vpack.c.bf16 (!%p139_p2), %v210_v13, %v209_v12  ;;  %v420_v17 = vpack.c.bf16 (!%p139_p2), %v212_v16, %v211_v15  ;;  %v213_v18 = vld [vmem:[%s577_s3 + $0x30] sm:$0xff] (!%p139_p2)  ;;  %v214_v19 = vld [vmem:[%s577_s3 + $0x38] sm:$0xff] (!%p139_p2)  ;;  %410 = vmatprep.mubr.msk.f32.mxu0 (!%p139_p2), %vm461_vm1, %v462_v20  ;;  %v215_v22 = vld [vmem:[%s577_s3 + $0x40] sm:$0xff] (!%p139_p2)  ;;  %v197_v42 = vshrl.u32 (!%p139_p2), %v173_v1, 7 }
   0x8   : > { %415 = vmatpush3.bf16.msra.mxu0 (!%p139_p2), %v414_v10  ;;  %v423_v21 = vpack.c.bf16 (!%p139_p2), %v214_v19, %v213_v18  ;;  %v216_v23 = vld [vmem:[%s577_s3 + $0x48] sm:$0xff] (!%p139_p2)  ;;  %v217_v25 = vld [vmem:[%s577_s3 + $0x50] sm:$0xff] (!%p139_p2)  ;;  %v218_v26 = vld [vmem:[%s577_s3 + $0x58] sm:$0xff] (!%p139_p2) }
   0x9   : > { %vm175_vm0 = vcmp.lt.s32.totalorder (!%p139_p2), %v174_v2, 32  ;;  %416 = vmatprep.subr.bf16.mxu0 (!%p139_p2), %v460_v11  ;;  %v426_v24 = vpack.c.bf16 (!%p139_p2), %v216_v23, %v215_v22  ;;  %v429_v27 = vpack.c.bf16 (!%p139_p2), %v218_v26, %v217_v25  ;;  %v219_v28 = vld [vmem:[%s577_s3 + $0x60] sm:$0xff] (!%p139_p2)  ;;  %v220_v29 = vld [vmem:[%s577_s3 + $0x68] sm:$0xff] (!%p139_p2)  ;;  %v221_v31 = vld [vmem:[%s577_s3 + $0x70] sm:$0xff] (!%p139_p2)  ;;  %v198_v43 = vsub.s32 (!%p139_p2), 0, %v197_v42 }
   0xa   : > { %v432_v30 = vpack.c.bf16 (!%p139_p2), %v220_v29, %v219_v28  ;;  %v222_v32 = vld [vmem:[%s577_s3 + $0x78] sm:$0xff] (!%p139_p2)  ;;  %v195_v44 = vld [vmem:[%s576_s2] sm:$0x7] (!%p139_p2)  ;;  %v204_v48 = vsub.s32 (!%p139_p2), 1, %v197_v42  ;;  %v225_v55 = vsub.s32 (!%p139_p2), 2, %v197_v42 }
   0xb   : > { %v435_v33 = vpack.c.bf16 (!%p139_p2), %v222_v32, %v221_v31  ;;  %v199_v46 = vrot.slane (!%p139_p2), %v195_v44, %v198_v43 }
   0xc   : > { %418 = vmatpush3.bf16.msra.mxu0 (!%p139_p2), %v417_v14  ;;  %v205_v52 = vrot.slane (!%p139_p2), %v195_v44, %v204_v48  ;;  %v226_v56 = vrot.slane (!%p139_p2), %v195_v44, %v225_v55 }
   0xd   : > { %s580_s0 = smov (!%p160_p3, %s352_s0), 1  ;;  %419 = vmatprep.subr.bf16.mxu0 %v460_v11 }
   0xe   : > { %s357_s16 = sshll.u32 %s580_s0, 3 }
   0xf   : > { %s163_s19 = scalar_lea.vmem %s575_s1, %s357_s16  ;;  %s167_s6 = scalar_lea.vmem %s578_s4, %s357_s16 }
  0x10   : > { %v504_v0 = vld [vmem:[%s163_s19] sm:$0xff]  ;;  %421 = vmatpush3.bf16.msra.mxu0 %v420_v17 }
  0x11   : > { %169 = vadd.xlane.f32.xlu0 %v504_v0  ;;  %422 = vmatprep.subr.bf16.mxu0 %v460_v11 }
  0x14   : > { %424 = vmatpush3.bf16.msra.mxu0 %v423_v21 }
  0x15   : > { %425 = vmatprep.subr.bf16.mxu0 %v460_v11 }
  0x18   : > { %427 = vmatpush3.bf16.msra.mxu0 %v426_v24 }
  0x19   : > { %428 = vmatprep.subr.bf16.mxu0 %v460_v11 }
  0x1c   : > { %430 = vmatpush3.bf16.msra.mxu0 %v429_v27 }
  0x1d   : > { %431 = vmatprep.subr.bf16.mxu0 %v460_v11 }
  0x20   : > { %433 = vmatpush3.bf16.msra.mxu0 %v432_v30 }
  0x21   : > { %434 = vmatprep.subr.bf16.mxu0 %v460_v11 }
  0x24   : > { %436 = vmatpush3.bf16.msra.mxu0 %v435_v33 }
  0x9e   : > { %v170_v3 = vpop.xlane.xlu0 %169 }
  0x9f   : > { %v171_v4 = vmul.f32 0.03125, %v170_v3 }
  0xa1   : > { %v509_v5 = vsub.f32 %v504_v0, %v171_v4 }
  0xa3   : > { %v178_v6 = vsel %vm175_vm0, %v509_v5, 0.0  ;;  %v200_v50 = vmul.f32 %v199_v46, %v509_v5 }
  0xa4   : > { %v179_v7 = vmul.f32 %v178_v6, %v178_v6 }
  0xa6   : > { %180 = vadd.xlane.f32.xlu0 %v179_v7 }
 0x133   : > { %v181_v34 = vpop.xlane.xlu0 %180 }
 0x134   : > { %v182_v35 = vmul.f32 0.032258064, %v181_v34 }
 0x136   : > { %448 = vrsqrt.f32 %v182_v35  ;;  %vm185_vm2 = vcmp.eq.f32.partialorder %v182_v35, inf  ;;  %v188_v38 = vand.u32 2147483648, %v182_v35  ;;  %vm187_vm3 = vcmp.eq.f32.partialorder %v182_v35, 0.0 }
 0x140   : > { %v449_v36 = vpop.eup %448 }
 0x141   : > { %v184_v37 = vmul.f32 %v449_v36, %v182_v35 }
 0x143   : > { %v186_v39 = vsel %vm185_vm2, %v182_v35, %v184_v37 }
 0x144   : > { %v189_v40 = vsel %vm187_vm3, %v188_v38, %v186_v39 }
 0x145   : > { %v190_v41 = vadd.f32 1e-06, %v189_v40 }
 0x147   : > { %450 = vrcp.f32 %v190_v41 }
 0x151   : > { %v451_v45 = vpop.eup %450 }
 0x152   : > { %v192_v47 = vmul.f32 %v451_v45, %v190_v41 }
 0x154   : > { %v193_v49 = vsub.f32 2.0, %v192_v47 }
 0x156   : > { %v194_v51 = vmul.f32 %v451_v45, %v193_v49 }
 0x158   : > { %v201_v53 = vmul.f32 %v200_v50, %v194_v51 }
 0x15a   : > { %v206_v54 = vadd.f32 %v205_v52, %v201_v53 }
 0x15c   : > { %411 = vmatmul.mubr.f32.vlgmr.msra.gmra.mrb[0].mxu0 %v206_v54 }
 0x22f   : > { %v293_v57 = vpop.f32.mrb[0].mxu0 }
 0x230   : > { %v294_v58 = vadd.f32 %v293_v57, %v226_v56  ;;  %v412_v59 = vpop.f32.mrb[1].mxu0 }
 0x232   : > { %v297_v60 = vadd.f32 %v294_v58, %v504_v0 }
 0x234   : > { %298 = vst [vmem:[%s167_s6] sm:$0xff] %v297_v60 }
 0x235 PF: > { %s15_s15 = sadd.s32 1, %s458_s15  }
 0x236   : > { %p12_p4 = scmp.ge.s32.totalorder %s15_s15, 4  }
 0x238   :  { %14 = sbr.rel (!%p12_p4) target bundleno = 1 (0x1), region = 62 }

</bundles_post_ra>
